<compile_context>
chip_gen: v5e
topology: v5e:2x2
jax: 0.10.0
libtpu: 0.0.40
codegen_flags: <defaults>
</compile_context>

<pallas_src>
import functools
import math

import jax
import jax.numpy as jnp
from jax import lax
from jax.experimental import pallas as pl
from jax.experimental.pallas import tpu as pltpu


def _round_up(x, m):
    return (x + m - 1) // m * m


def _pick_block_q(T):
    """Largest reasonable query block that divides T (full T for small seqs)."""
    if T <= 512:
        return T
    for cand in (512, 256, 128):
        if T % cand == 0:
            return cand
    return T


# ----------------------------------------------------------------------------
# Kernel body.  Grid = (B, T // block_q).
#   t == 0 : qkv_scratch = x @ Wqkv   (full sequence, stays VMEM resident)
#   every t: for each head h (static unroll):
#              s   = q_h k_h^T  (scale already folded into Wq) [+ causal mask]
#              w   = softmax(s)        (f32, approx-reciprocal denominator)
#              acc += (w v_h) @ Wp_T[h]
#            out_block = acc + bias
# ----------------------------------------------------------------------------
def _mhsa_kernel(x_ref, wqkv_ref, wpt_ref, bias_ref, o_ref,
                 qkv_ref, acc_ref, *, num_heads, d_pad, block_q, causal):
    t = pl.program_id(1)
    T = x_ref.shape[1]
    H, Dp = num_heads, d_pad
    dt = x_ref.dtype

    # Fused QKV projection for the whole sequence, once per batch element.
    @pl.when(t == 0)
    def _():
        qkv_ref[...] = jnp.dot(
            x_ref[0], wqkv_ref[...],
            preferred_element_type=jnp.float32).astype(dt)

    q_start = pl.multiple_of(t * block_q, block_q)

    # Causal mask generated on the fly -- no (T,T) tensor in HBM/VMEM.
    if causal:
        row = lax.broadcasted_iota(jnp.int32, (block_q, T), 0) + t * block_q
        col = lax.broadcasted_iota(jnp.int32, (block_q, T), 1)
        keep = col <= row

    acc_ref[...] = jnp.zeros_like(acc_ref)

    for h in range(H):                       # static unroll; H is small
        qh = qkv_ref[pl.ds(q_start, block_q), pl.ds(h * Dp, Dp)]
        kh = qkv_ref[:, pl.ds((H + h) * Dp, Dp)]
        vh = qkv_ref[:, pl.ds((2 * H + h) * Dp, Dp)]

        # q_h @ k_h^T without materializing a transpose (contract on Dp).
        # 1/sqrt(E) is folded into the Q weights at pack time.
        scores = lax.dot_general(
            qh, kh, dimension_numbers=(((1,), (1,)), ((), ())),
            preferred_element_type=jnp.float32)          # (block_q, T) f32
        if causal:
            scores = jnp.where(keep, scores, -1e30)

        # numerically stable softmax in f32
        m = jnp.max(scores, axis=-1, keepdims=True)
        p = jnp.exp(scores - m)
        denom = jnp.sum(p, axis=-1, keepdims=True)
        probs = (p * pl.reciprocal(denom, approx=True)).astype(dt)

        oh = jnp.dot(probs, vh, preferred_element_type=jnp.float32).astype(dt)
        # Per-head accumulation into the projection accumulator (replaces the
        # lane-repacking concat + single big projection matmul).
        acc_ref[...] += jnp.dot(oh, wpt_ref[pl.ds(h * Dp, Dp), :],
                                preferred_element_type=jnp.float32)

    o_ref[0] = (acc_ref[...] + bias_ref[...]).astype(o_ref.dtype)


# ----------------------------------------------------------------------------
# One-time parameter transform (call once, not per forward step).
# ----------------------------------------------------------------------------
def pack_params(params, compute_dtype=jnp.bfloat16):
    """params:
         wq/wk/wv : (H, E, D)  per-head weights, pre-transposed (q = x @ wq[h])
         wp_t     : (E, E)     projection weight transposed (E = H*D)
         bias     : (E,)
       Returns lane-aligned packed weights in `compute_dtype`."""
    H, E, D = params["wq"].shape
    Dp = _round_up(D, 128)                    # lane-align each head block
    # Reference scales scores by 1/sqrt(embed_size) (not head_size) -- match it.
    scale = 1.0 / math.sqrt(float(E))

    def stack(w, s=1.0):                      # (H,E,D) -> (E, H*Dp), zero-pad
        w = w * s
        w = jnp.pad(w, ((0, 0), (0, 0), (0, Dp - D)))
        return jnp.transpose(w, (1, 0, 2)).reshape(E, H * Dp)

    w_qkv = jnp.concatenate(
        [stack(params["wq"], scale), stack(params["wk"]), stack(params["wv"])],
        axis=-1).astype(compute_dtype)                        # (E, 3*H*Dp)

    wp_t = params["wp_t"].reshape(H, D, E)
    wp_t = jnp.pad(wp_t, ((0, 0), (0, Dp - D), (0, 0)))
    wp_t = wp_t.reshape(H * Dp, E).astype(compute_dtype)      # (H*Dp, E)

    bias = params["bias"].reshape(1, E).astype(jnp.float32)
    return w_qkv, wp_t, bias


# ----------------------------------------------------------------------------
# Forward wrapper (jit-cached).  Compute dtype is inferred from the packed
# weights (bf16 by default via pack_params).
# ----------------------------------------------------------------------------
@functools.partial(jax.jit, static_argnames=("num_heads", "causal"))
def multi_head_self_attention(x, w_qkv, wp_t, bias, *, num_heads, causal):
    B, T, E = x.shape
    H = num_heads
    Dp = w_qkv.shape[1] // (3 * H)
    compute_dtype = w_qkv.dtype
    block_q = _pick_block_q(T)
    n_q = T // block_q

    kernel = functools.partial(_mhsa_kernel, num_heads=H, d_pad=Dp,
                               block_q=block_q, causal=causal)

    # Explicit VMEM budget (default scoped limits are 16/32 MiB on v5e/v6e-v7x).
    cbytes = jnp.dtype(compute_dtype).itemsize
    est = (2 * T * E * cbytes                 # x tiles (double-buffered over B)
           + 2 * block_q * E * 4              # out tiles (f32)
           + 2 * E * 3 * H * Dp * cbytes      # Wqkv (resident)
           + 2 * H * Dp * E * cbytes          # Wp_T (resident)
           + 2 * E * 4                        # bias
           + T * 3 * H * Dp * cbytes          # QKV scratch
           + block_q * E * 4)                 # projection accumulator
    vmem_limit = int(min(max(2 * est, 32 * 1024 * 1024), 64 * 1024 * 1024))

    return pl.pallas_call(
        kernel,
        out_shape=jax.ShapeDtypeStruct((B, T, E), jnp.float32),
        grid_spec=pltpu.PrefetchScalarGridSpec(
            num_scalar_prefetch=0,
            grid=(B, n_q),
            in_specs=[
                pl.BlockSpec((1, T, E), lambda b, t: (b, 0, 0)),      # x
                pl.BlockSpec((E, 3 * H * Dp), lambda b, t: (0, 0)),   # Wqkv
                pl.BlockSpec((H * Dp, E), lambda b, t: (0, 0)),       # Wp_T
                pl.BlockSpec((1, E), lambda b, t: (0, 0)),            # bias
            ],
            out_specs=pl.BlockSpec((1, block_q, E), lambda b, t: (b, t, 0)),
            scratch_shapes=[
                pltpu.VMEM((T, 3 * H * Dp), compute_dtype),  # QKV (per-batch resident)
                pltpu.VMEM((block_q, E), jnp.float32),       # projection accumulator
            ]),
        compiler_params=pltpu.CompilerParams(
            dimension_semantics=("parallel", "arbitrary"),
            vmem_limit_bytes=vmem_limit),
    )(x.astype(compute_dtype), w_qkv, wp_t, bias)


# ----------------------------------------------------------------------------
# Pure-JAX reference mirroring the PyTorch module (dropout = 0 / eval).
# ----------------------------------------------------------------------------
def reference(x, params, *, causal):
    B, T, E = x.shape
    H, _, D = params["wq"].shape
    outs = []
    for h in range(H):
        q = x @ params["wq"][h]
        k = x @ params["wk"][h]
        v = x @ params["wv"][h]
        w = (q @ jnp.swapaxes(k, -2, -1)) / (E ** 0.5)
        if causal:
            tril = jnp.tril(jnp.ones((T, T)))
            w = jnp.where(tril == 0, -jnp.inf, w)
        w = jax.nn.softmax(w, axis=-1)
        outs.append(w @ v)
    cat = jnp.concatenate(outs, axis=-1)
    return cat @ params["wp_t"] + params["bias"]


if __name__ == "__main__":
    # Small shapes consistent with the module
    B, T, E = 2, 8, 32
    num_heads = 4
    D = E // num_heads          # head_size
    causal = True               # mask=True

    key = jax.random.PRNGKey(0)
    kx, kq, kk, kv, kp, kb = jax.random.split(key, 6)

    x = jax.random.normal(kx, (B, T, E), dtype=jnp.float32)

    # PyTorch Linear(embed, head, bias=False) has weight (head, embed); stored
    # pre-transposed as (E, D) per head.  Projection Linear(E, E): weight
    # stored transposed as (E, E), bias (E,).
    params = {
        "wq": jax.random.normal(kq, (num_heads, E, D), dtype=jnp.float32) * 0.1,
        "wk": jax.random.normal(kk, (num_heads, E, D), dtype=jnp.float32) * 0.1,
        "wv": jax.random.normal(kv, (num_heads, E, D), dtype=jnp.float32) * 0.1,
        "wp_t": jax.random.normal(kp, (E, E), dtype=jnp.float32) * 0.1,
        "bias": jax.random.normal(kb, (E,), dtype=jnp.float32) * 0.1,
    }

    # One-time parameter transforms (bf16 fast path + f32 parity path).
    w_qkv_bf16, wp_t_bf16, bias2d = pack_params(params, jnp.bfloat16)
    w_qkv_f32, wp_t_f32, _ = pack_params(params, jnp.float32)

    # Fast (default) bf16-MXU path.
    out_bf16 = multi_head_self_attention(
        x, w_qkv_bf16, wp_t_bf16, bias2d, num_heads=num_heads, causal=causal)
    out_bf16 = jax.block_until_ready(out_bf16)

    # f32 path for tight numerical parity with the reference.
    out_f32 = multi_head_self_attention(
        x, w_qkv_f32, wp_t_f32, bias2d, num_heads=num_heads, causal=causal)
    out_f32 = jax.block_until_ready(out_f32)

    ref = reference(x, params, causal=causal)
    assert out_bf16.shape == (B, T, E)
    assert out_f32.shape == (B, T, E)
    # f32 path: only approx-reciprocal / matmul-order differences.
    assert jnp.allclose(out_f32, ref, atol=3e-3, rtol=1e-2), "f32 mismatch vs reference"
    # bf16 path: widened tolerance for bf16 input/probs casts (expected).
    assert jnp.allclose(out_bf16, ref, atol=5e-2, rtol=5e-2), "bf16 mismatch vs reference"

    print("KERNEL_OK")
</pallas_src>

<mosaic_0001>
module attributes {stable_mosaic.version = 11 : i64} {
  func.func @_mhsa_kernel(%arg0: i32, %arg1: i32, %arg2: memref<1x8x32xbf16, #tpu.memory_space<vmem>>, %arg3: memref<32x1536xbf16, #tpu.memory_space<vmem>>, %arg4: memref<512x32xbf16, #tpu.memory_space<vmem>>, %arg5: memref<1x32xf32, #tpu.memory_space<vmem>>, %arg6: memref<1x8x32xf32, #tpu.memory_space<vmem>>, %arg7: memref<8x1536xbf16, #tpu.memory_space<vmem>>, %arg8: memref<8x32xf32, #tpu.memory_space<vmem>>) attributes {dimension_semantics = [#tpu.dimension_semantics<parallel>, #tpu.dimension_semantics<arbitrary>], iteration_bounds = array<i64: 2, 1>, scalar_prefetch = 0 : i64, scratch_operands = 2 : i64, tpu.core_type = #tpu.core_type<tc>, window_params = [{transform_indices = @transform_0, window_bounds = array<i64: 1, 8, 32>}, {pipeline_mode = #tpu.pipeline_mode<synchronous>, transform_indices = @transform_1, window_bounds = array<i64: 32, 1536>}, {pipeline_mode = #tpu.pipeline_mode<synchronous>, transform_indices = @transform_2, window_bounds = array<i64: 512, 32>}, {pipeline_mode = #tpu.pipeline_mode<synchronous>, transform_indices = @transform_3, window_bounds = array<i64: 1, 32>}, {transform_indices = @transform_4, window_bounds = array<i64: 1, 8, 32>}]} {
    %c0_i32 = arith.constant 0 : i32
    %0 = arith.cmpi eq, %arg1, %c0_i32 : i32
    %1 = arith.extui %0 : i1 to i32
    %c0_i32_0 = arith.constant 0 : i32
    %2 = arith.cmpi ne, %1, %c0_i32_0 : i32
    scf.if %2 {
      %c0_67 = arith.constant 0 : index
      %c0_68 = arith.constant 0 : index
      %c0_69 = arith.constant 0 : index
      %120 = vector.load %arg2[%c0_67, %c0_68, %c0_69] : memref<1x8x32xbf16, #tpu.memory_space<vmem>>, vector<1x8x32xbf16>
      %121 = vector.shape_cast %120 : vector<1x8x32xbf16> to vector<8x32xbf16>
      %c0_70 = arith.constant 0 : index
      %c0_71 = arith.constant 0 : index
      %122 = vector.load %arg3[%c0_70, %c0_71] : memref<32x1536xbf16, #tpu.memory_space<vmem>>, vector<32x1536xbf16>
      %cst_72 = arith.constant dense<0.000000e+00> : vector<8x1536xf32>
      %123 = tpu.matmul %121, %122, %cst_72 {dimension_numbers = #tpu.dot_dimension_numbers<[1], [0], [0], [1], [0, 0, 1, 1], [], []>} : vector<8x32xbf16>, vector<32x1536xbf16>, vector<8x1536xf32> -> vector<8x1536xf32>
      %124 = arith.truncf %123 : vector<8x1536xf32> to vector<8x1536xbf16>
      %c0_73 = arith.constant 0 : index
      %c0_74 = arith.constant 0 : index
      %125 = vector.load %arg7[%c0_73, %c0_74] : memref<8x1536xbf16, #tpu.memory_space<vmem>>, vector<8x1536xbf16>
      tpu.vector_store %arg7[%c0_73, %c0_74], %124 {strides = array<i32>} : memref<8x1536xbf16, #tpu.memory_space<vmem>>, vector<8x1536xbf16>,
    } else {
    }
    %c8_i32 = arith.constant 8 : i32
    %3 = arith.muli %arg1, %c8_i32 : i32
    %4 = tpu.assume_multiple %3, 8 : i32
    %5 = tpu.iota {dimensions = array<i32: 0>} : vector<8x8xi32>
    %c8_i32_1 = arith.constant 8 : i32
    %6 = arith.muli %arg1, %c8_i32_1 : i32
    %7 = vector.broadcast %6 : i32 to vector<8x8xi32>
    %8 = arith.addi %5, %7 : vector<8x8xi32>
    %9 = tpu.iota {dimensions = array<i32: 1>} : vector<8x8xi32>
    %10 = arith.cmpi sle, %9, %8 : vector<8x8xi32>
    %cst = arith.constant 0.000000e+00 : f32
    %11 = vector.broadcast %cst : f32 to vector<8x32xf32>
    %c0 = arith.constant 0 : index
    %c0_2 = arith.constant 0 : index
    %12 = vector.load %arg8[%c0, %c0_2] : memref<8x32xf32, #tpu.memory_space<vmem>>, vector<8x32xf32>
    tpu.vector_store %arg8[%c0, %c0_2], %11 {strides = array<i32>} : memref<8x32xf32, #tpu.memory_space<vmem>>, vector<8x32xf32>,
    %13 = arith.index_cast %4 : i32 to index
    %c0_3 = arith.constant 0 : index
    %14 = vector.load %arg7[%13, %c0_3] : memref<8x1536xbf16, #tpu.memory_space<vmem>>, vector<8x128xbf16>
    %c0_4 = arith.constant 0 : index
    %c512 = arith.constant 512 : index
    %15 = vector.load %arg7[%c0_4, %c512] : memref<8x1536xbf16, #tpu.memory_space<vmem>>, vector<8x128xbf16>
    %c0_5 = arith.constant 0 : index
    %c1024 = arith.constant 1024 : index
    %16 = vector.load %arg7[%c0_5, %c1024] : memref<8x1536xbf16, #tpu.memory_space<vmem>>, vector<8x128xbf16>
    %cst_6 = arith.constant dense<0.000000e+00> : vector<8x8xf32>
    %17 = tpu.matmul %14, %15, %cst_6 {dimension_numbers = #tpu.dot_dimension_numbers<[1], [1], [0], [0], [0, 0, 1, 0], [], []>} : vector<8x128xbf16>, vector<8x128xbf16>, vector<8x8xf32> -> vector<8x8xf32>
    %cst_7 = arith.constant -1.000000e+30 : f32
    %18 = vector.broadcast %cst_7 : f32 to vector<8x8xf32>
    %19 = arith.select %10, %17, %18 : vector<8x8xi1>, vector<8x8xf32>
    %cst_8 = arith.constant dense<0xFF800000> : vector<8xf32>
    %20 = vector.multi_reduction <maximumf>, %19, %cst_8 [1] : vector<8x8xf32> to vector<8xf32>
    %21 = vector.shape_cast %20 : vector<8xf32> to vector<8x1xf32>
    %22 = vector.broadcast %21 : vector<8x1xf32> to vector<8x8xf32>
    %23 = arith.subf %19, %22 : vector<8x8xf32>
    %24 = math.exp %23 : vector<8x8xf32>
    %cst_9 = arith.constant dense<0.000000e+00> : vector<8xf32>
    %25 = vector.multi_reduction <add>, %24, %cst_9 [1] : vector<8x8xf32> to vector<8xf32>
    %26 = vector.shape_cast %25 : vector<8xf32> to vector<8x1xf32>
    %27 = tpu.reciprocal %26 {approx = true} : vector<8x1xf32> -> vector<8x1xf32>
    %28 = vector.broadcast %27 : vector<8x1xf32> to vector<8x8xf32>
    %29 = arith.mulf %24, %28 : vector<8x8xf32>
    %30 = arith.truncf %29 : vector<8x8xf32> to vector<8x8xbf16>
    %cst_10 = arith.constant dense<0.000000e+00> : vector<8x128xf32>
    %31 = tpu.matmul %30, %16, %cst_10 {dimension_numbers = #tpu.dot_dimension_numbers<[1], [0], [0], [1], [0, 0, 1, 1], [], []>} : vector<8x8xbf16>, vector<8x128xbf16>, vector<8x128xf32> -> vector<8x128xf32>
    %32 = arith.truncf %31 : vector<8x128xf32> to vector<8x128xbf16>
    %c0_11 = arith.constant 0 : index
    %c0_12 = arith.constant 0 : index
    %33 = vector.load %arg8[%c0_11, %c0_12] : memref<8x32xf32, #tpu.memory_space<vmem>>, vector<8x32xf32>
    %c0_13 = arith.constant 0 : index
    %c0_14 = arith.constant 0 : index
    %34 = vector.load %arg4[%c0_13, %c0_14] : memref<512x32xbf16, #tpu.memory_space<vmem>>, vector<128x32xbf16>
    %cst_15 = arith.constant dense<0.000000e+00> : vector<8x32xf32>
    %35 = tpu.matmul %32, %34, %cst_15 {dimension_numbers = #tpu.dot_dimension_numbers<[1], [0], [0], [1], [0, 0, 1, 1], [], []>} : vector<8x128xbf16>, vector<128x32xbf16>, vector<8x32xf32> -> vector<8x32xf32>
    %36 = arith.addf %33, %35 : vector<8x32xf32>
    %c0_16 = arith.constant 0 : index
    %c0_17 = arith.constant 0 : index
    %37 = vector.load %arg8[%c0_16, %c0_17] : memref<8x32xf32, #tpu.memory_space<vmem>>, vector<8x32xf32>
    tpu.vector_store %arg8[%c0_16, %c0_17], %36 {strides = array<i32>} : memref<8x32xf32, #tpu.memory_space<vmem>>, vector<8x32xf32>,
    %38 = arith.index_cast %4 : i32 to index
    %c128 = arith.constant 128 : index
    %39 = vector.load %arg7[%38, %c128] : memref<8x1536xbf16, #tpu.memory_space<vmem>>, vector<8x128xbf16>
    %c0_18 = arith.constant 0 : index
    %c640 = arith.constant 640 : index
    %40 = vector.load %arg7[%c0_18, %c640] : memref<8x1536xbf16, #tpu.memory_space<vmem>>, vector<8x128xbf16>
    %c0_19 = arith.constant 0 : index
    %c1152 = arith.constant 1152 : index
    %41 = vector.load %arg7[%c0_19, %c1152] : memref<8x1536xbf16, #tpu.memory_space<vmem>>, vector<8x128xbf16>
    %cst_20 = arith.constant dense<0.000000e+00> : vector<8x8xf32>
    %42 = tpu.matmul %39, %40, %cst_20 {dimension_numbers = #tpu.dot_dimension_numbers<[1], [1], [0], [0], [0, 0, 1, 0], [], []>} : vector<8x128xbf16>, vector<8x128xbf16>, vector<8x8xf32> -> vector<8x8xf32>
    %cst_21 = arith.constant -1.000000e+30 : f32
    %43 = vector.broadcast %cst_21 : f32 to vector<8x8xf32>
    %44 = arith.select %10, %42, %43 : vector<8x8xi1>, vector<8x8xf32>
    %cst_22 = arith.constant dense<0xFF800000> : vector<8xf32>
    %45 = vector.multi_reduction <maximumf>, %44, %cst_22 [1] : vector<8x8xf32> to vector<8xf32>
    %46 = vector.shape_cast %45 : vector<8xf32> to vector<8x1xf32>
    %47 = vector.broadcast %46 : vector<8x1xf32> to vector<8x8xf32>
    %48 = arith.subf %44, %47 : vector<8x8xf32>
    %49 = math.exp %48 : vector<8x8xf32>
    %cst_23 = arith.constant dense<0.000000e+00> : vector<8xf32>
    %50 = vector.multi_reduction <add>, %49, %cst_23 [1] : vector<8x8xf32> to vector<8xf32>
    %51 = vector.shape_cast %50 : vector<8xf32> to vector<8x1xf32>
    %52 = tpu.reciprocal %51 {approx = true} : vector<8x1xf32> -> vector<8x1xf32>
    %53 = vector.broadcast %52 : vector<8x1xf32> to vector<8x8xf32>
    %54 = arith.mulf %49, %53 : vector<8x8xf32>
    %55 = arith.truncf %54 : vector<8x8xf32> to vector<8x8xbf16>
    %cst_24 = arith.constant dense<0.000000e+00> : vector<8x128xf32>
    %56 = tpu.matmul %55, %41, %cst_24 {dimension_numbers = #tpu.dot_dimension_numbers<[1], [0], [0], [1], [0, 0, 1, 1], [], []>} : vector<8x8xbf16>, vector<8x128xbf16>, vector<8x128xf32> -> vector<8x128xf32>
    %57 = arith.truncf %56 : vector<8x128xf32> to vector<8x128xbf16>
    %c0_25 = arith.constant 0 : index
    %c0_26 = arith.constant 0 : index
    %58 = vector.load %arg8[%c0_25, %c0_26] : memref<8x32xf32, #tpu.memory_space<vmem>>, vector<8x32xf32>
    %c128_27 = arith.constant 128 : index
    %c0_28 = arith.constant 0 : index
    %59 = vector.load %arg4[%c128_27, %c0_28] : memref<512x32xbf16, #tpu.memory_space<vmem>>, vector<128x32xbf16>
    %cst_29 = arith.constant dense<0.000000e+00> : vector<8x32xf32>
    %60 = tpu.matmul %57, %59, %cst_29 {dimension_numbers = #tpu.dot_dimension_numbers<[1], [0], [0], [1], [0, 0, 1, 1], [], []>} : vector<8x128xbf16>, vector<128x32xbf16>, vector<8x32xf32> -> vector<8x32xf32>
    %61 = arith.addf %58, %60 : vector<8x32xf32>
    %c0_30 = arith.constant 0 : index
    %c0_31 = arith.constant 0 : index
    %62 = vector.load %arg8[%c0_30, %c0_31] : memref<8x32xf32, #tpu.memory_space<vmem>>, vector<8x32xf32>
    tpu.vector_store %arg8[%c0_30, %c0_31], %61 {strides = array<i32>} : memref<8x32xf32, #tpu.memory_space<vmem>>, vector<8x32xf32>,
    %63 = arith.index_cast %4 : i32 to index
    %c256 = arith.constant 256 : index
    %64 = vector.load %arg7[%63, %c256] : memref<8x1536xbf16, #tpu.memory_space<vmem>>, vector<8x128xbf16>
    %c0_32 = arith.constant 0 : index
    %c768 = arith.constant 768 : index
    %65 = vector.load %arg7[%c0_32, %c768] : memref<8x1536xbf16, #tpu.memory_space<vmem>>, vector<8x128xbf16>
    %c0_33 = arith.constant 0 : index
    %c1280 = arith.constant 1280 : index
    %66 = vector.load %arg7[%c0_33, %c1280] : memref<8x1536xbf16, #tpu.memory_space<vmem>>, vector<8x128xbf16>
    %cst_34 = arith.constant dense<0.000000e+00> : vector<8x8xf32>
    %67 = tpu.matmul %64, %65, %cst_34 {dimension_numbers = #tpu.dot_dimension_numbers<[1], [1], [0], [0], [0, 0, 1, 0], [], []>} : vector<8x128xbf16>, vector<8x128xbf16>, vector<8x8xf32> -> vector<8x8xf32>
    %cst_35 = arith.constant -1.000000e+30 : f32
    %68 = vector.broadcast %cst_35 : f32 to vector<8x8xf32>
    %69 = arith.select %10, %67, %68 : vector<8x8xi1>, vector<8x8xf32>
    %cst_36 = arith.constant dense<0xFF800000> : vector<8xf32>
    %70 = vector.multi_reduction <maximumf>, %69, %cst_36 [1] : vector<8x8xf32> to vector<8xf32>
    %71 = vector.shape_cast %70 : vector<8xf32> to vector<8x1xf32>
    %72 = vector.broadcast %71 : vector<8x1xf32> to vector<8x8xf32>
    %73 = arith.subf %69, %72 : vector<8x8xf32>
    %74 = math.exp %73 : vector<8x8xf32>
    %cst_37 = arith.constant dense<0.000000e+00> : vector<8xf32>
    %75 = vector.multi_reduction <add>, %74, %cst_37 [1] : vector<8x8xf32> to vector<8xf32>
    %76 = vector.shape_cast %75 : vector<8xf32> to vector<8x1xf32>
    %77 = tpu.reciprocal %76 {approx = true} : vector<8x1xf32> -> vector<8x1xf32>
    %78 = vector.broadcast %77 : vector<8x1xf32> to vector<8x8xf32>
    %79 = arith.mulf %74, %78 : vector<8x8xf32>
    %80 = arith.truncf %79 : vector<8x8xf32> to vector<8x8xbf16>
    %cst_38 = arith.constant dense<0.000000e+00> : vector<8x128xf32>
    %81 = tpu.matmul %80, %66, %cst_38 {dimension_numbers = #tpu.dot_dimension_numbers<[1], [0], [0], [1], [0, 0, 1, 1], [], []>} : vector<8x8xbf16>, vector<8x128xbf16>, vector<8x128xf32> -> vector<8x128xf32>
    %82 = arith.truncf %81 : vector<8x128xf32> to vector<8x128xbf16>
    %c0_39 = arith.constant 0 : index
    %c0_40 = arith.constant 0 : index
    %83 = vector.load %arg8[%c0_39, %c0_40] : memref<8x32xf32, #tpu.memory_space<vmem>>, vector<8x32xf32>
    %c256_41 = arith.constant 256 : index
    %c0_42 = arith.constant 0 : index
    %84 = vector.load %arg4[%c256_41, %c0_42] : memref<512x32xbf16, #tpu.memory_space<vmem>>, vector<128x32xbf16>
    %cst_43 = arith.constant dense<0.000000e+00> : vector<8x32xf32>
    %85 = tpu.matmul %82, %84, %cst_43 {dimension_numbers = #tpu.dot_dimension_numbers<[1], [0], [0], [1], [0, 0, 1, 1], [], []>} : vector<8x128xbf16>, vector<128x32xbf16>, vector<8x32xf32> -> vector<8x32xf32>
    %86 = arith.addf %83, %85 : vector<8x32xf32>
    %c0_44 = arith.constant 0 : index
    %c0_45 = arith.constant 0 : index
    %87 = vector.load %arg8[%c0_44, %c0_45] : memref<8x32xf32, #tpu.memory_space<vmem>>, vector<8x32xf32>
    tpu.vector_store %arg8[%c0_44, %c0_45], %86 {strides = array<i32>} : memref<8x32xf32, #tpu.memory_space<vmem>>, vector<8x32xf32>,
    %88 = arith.index_cast %4 : i32 to index
    %c384 = arith.constant 384 : index
    %89 = vector.load %arg7[%88, %c384] : memref<8x1536xbf16, #tpu.memory_space<vmem>>, vector<8x128xbf16>
    %c0_46 = arith.constant 0 : index
    %c896 = arith.constant 896 : index
    %90 = vector.load %arg7[%c0_46, %c896] : memref<8x1536xbf16, #tpu.memory_space<vmem>>, vector<8x128xbf16>
    %c0_47 = arith.constant 0 : index
    %c1408 = arith.constant 1408 : index
    %91 = vector.load %arg7[%c0_47, %c1408] : memref<8x1536xbf16, #tpu.memory_space<vmem>>, vector<8x128xbf16>
    %cst_48 = arith.constant dense<0.000000e+00> : vector<8x8xf32>
    %92 = tpu.matmul %89, %90, %cst_48 {dimension_numbers = #tpu.dot_dimension_numbers<[1], [1], [0], [0], [0, 0, 1, 0], [], []>} : vector<8x128xbf16>, vector<8x128xbf16>, vector<8x8xf32> -> vector<8x8xf32>
    %cst_49 = arith.constant -1.000000e+30 : f32
    %93 = vector.broadcast %cst_49 : f32 to vector<8x8xf32>
    %94 = arith.select %10, %92, %93 : vector<8x8xi1>, vector<8x8xf32>
    %cst_50 = arith.constant dense<0xFF800000> : vector<8xf32>
    %95 = vector.multi_reduction <maximumf>, %94, %cst_50 [1] : vector<8x8xf32> to vector<8xf32>
    %96 = vector.shape_cast %95 : vector<8xf32> to vector<8x1xf32>
    %97 = vector.broadcast %96 : vector<8x1xf32> to vector<8x8xf32>
    %98 = arith.subf %94, %97 : vector<8x8xf32>
    %99 = math.exp %98 : vector<8x8xf32>
    %cst_51 = arith.constant dense<0.000000e+00> : vector<8xf32>
    %100 = vector.multi_reduction <add>, %99, %cst_51 [1] : vector<8x8xf32> to vector<8xf32>
    %101 = vector.shape_cast %100 : vector<8xf32> to vector<8x1xf32>
    %102 = tpu.reciprocal %101 {approx = true} : vector<8x1xf32> -> vector<8x1xf32>
    %103 = vector.broadcast %102 : vector<8x1xf32> to vector<8x8xf32>
    %104 = arith.mulf %99, %103 : vector<8x8xf32>
    %105 = arith.truncf %104 : vector<8x8xf32> to vector<8x8xbf16>
    %cst_52 = arith.constant dense<0.000000e+00> : vector<8x128xf32>
    %106 = tpu.matmul %105, %91, %cst_52 {dimension_numbers = #tpu.dot_dimension_numbers<[1], [0], [0], [1], [0, 0, 1, 1], [], []>} : vector<8x8xbf16>, vector<8x128xbf16>, vector<8x128xf32> -> vector<8x128xf32>
    %107 = arith.truncf %106 : vector<8x128xf32> to vector<8x128xbf16>
    %c0_53 = arith.constant 0 : index
    %c0_54 = arith.constant 0 : index
    %108 = vector.load %arg8[%c0_53, %c0_54] : memref<8x32xf32, #tpu.memory_space<vmem>>, vector<8x32xf32>
    %c384_55 = arith.constant 384 : index
    %c0_56 = arith.constant 0 : index
    %109 = vector.load %arg4[%c384_55, %c0_56] : memref<512x32xbf16, #tpu.memory_space<vmem>>, vector<128x32xbf16>
    %cst_57 = arith.constant dense<0.000000e+00> : vector<8x32xf32>
    %110 = tpu.matmul %107, %109, %cst_57 {dimension_numbers = #tpu.dot_dimension_numbers<[1], [0], [0], [1], [0, 0, 1, 1], [], []>} : vector<8x128xbf16>, vector<128x32xbf16>, vector<8x32xf32> -> vector<8x32xf32>
    %111 = arith.addf %108, %110 : vector<8x32xf32>
    %c0_58 = arith.constant 0 : index
    %c0_59 = arith.constant 0 : index
    %112 = vector.load %arg8[%c0_58, %c0_59] : memref<8x32xf32, #tpu.memory_space<vmem>>, vector<8x32xf32>
    tpu.vector_store %arg8[%c0_58, %c0_59], %111 {strides = array<i32>} : memref<8x32xf32, #tpu.memory_space<vmem>>, vector<8x32xf32>,
    %c0_60 = arith.constant 0 : index
    %c0_61 = arith.constant 0 : index
    %113 = vector.load %arg8[%c0_60, %c0_61] : memref<8x32xf32, #tpu.memory_space<vmem>>, vector<8x32xf32>
    %c0_62 = arith.constant 0 : index
    %c0_63 = arith.constant 0 : index
    %114 = vector.load %arg5[%c0_62, %c0_63] : memref<1x32xf32, #tpu.memory_space<vmem>>, vector<1x32xf32>
    %115 = vector.broadcast %114 : vector<1x32xf32> to vector<8x32xf32>
    %116 = arith.addf %113, %115 : vector<8x32xf32>
    %c0_64 = arith.constant 0 : index
    %c0_65 = arith.constant 0 : index
    %c0_66 = arith.constant 0 : index
    %117 = vector.load %arg6[%c0_64, %c0_65, %c0_66] : memref<1x8x32xf32, #tpu.memory_space<vmem>>, vector<1x8x32xf32>
    %118 = vector.shape_cast %117 : vector<1x8x32xf32> to vector<8x32xf32>
    %119 = vector.shape_cast %116 : vector<8x32xf32> to vector<1x8x32xf32>
    tpu.vector_store %arg6[%c0_64, %c0_65, %c0_66], %119 {strides = array<i32>} : memref<1x8x32xf32, #tpu.memory_space<vmem>>, vector<1x8x32xf32>,
    return
  }
  func.func @transform_0(%arg0: i32, %arg1: i32) -> (i32, i32, i32) {
    %c0_i32 = arith.constant 0 : i32
    %c0_i32_0 = arith.constant 0 : i32
    %c0_i32_1 = arith.constant 0 : i32
    return %arg0, %c0_i32, %c0_i32_0 : i32, i32, i32
  }
  func.func @transform_1(%arg0: i32, %arg1: i32) -> (i32, i32) {
    %c0_i32 = arith.constant 0 : i32
    %c0_i32_0 = arith.constant 0 : i32
    %c0_i32_1 = arith.constant 0 : i32
    return %c0_i32, %c0_i32_0 : i32, i32
  }
  func.func @transform_2(%arg0: i32, %arg1: i32) -> (i32, i32) {
    %c0_i32 = arith.constant 0 : i32
    %c0_i32_0 = arith.constant 0 : i32
    %c0_i32_1 = arith.constant 0 : i32
    return %c0_i32, %c0_i32_0 : i32, i32
  }
  func.func @transform_3(%arg0: i32, %arg1: i32) -> (i32, i32) {
    %c0_i32 = arith.constant 0 : i32
    %c0_i32_0 = arith.constant 0 : i32
    %c0_i32_1 = arith.constant 0 : i32
    return %c0_i32, %c0_i32_0 : i32, i32
  }
  func.func @transform_4(%arg0: i32, %arg1: i32) -> (i32, i32, i32) {
    %c0_i32 = arith.constant 0 : i32
    %c0_i32_0 = arith.constant 0 : i32
    return %arg0, %arg1, %c0_i32 : i32, i32, i32
  }
}

</mosaic_0001>

<bundles_post_ra>
// kernel: multi_head_self_attention.1
= control target key start
LH: loop header
LB: loop body
LE: loop exit
PB: predicated region body
PF: predicated region fallthrough
CT: control target
= control target key end

     0   :  { %9 = vsyncpa [#allocation5], 0  ;;  %s2034_s0 = inlined_call_operand.vmem [shape: bf16[2,8,32], index: 0, kind: input, shape index: {}]   ;;  %s2035_s1 = inlined_call_operand.vmem [shape: bf16[32,1536], index: 1, kind: input, shape index: {}]   ;;  %s2036_s2 = inlined_call_operand.vmem [shape: bf16[512,32], index: 2, kind: input, shape index: {}]   ;;  %s2037_s3 = inlined_call_operand.vmem [shape: f32[1,32], index: 3, kind: input, shape index: {}]   ;;  %s2038_s4 = inlined_call_operand.hbm [shape: f32[2,8,32], index: 4, kind: output, shape index: {}]  }
   0x1   :  { %11 = vsyncpa [#allocation5 + $0x1], 0  ;;  %s1642_s15 = smov 0   ;;  %s1644_s16 = smov 0  }
   0x2   :  { %s1646_s17 = smov 0   ;;  %s1648_s18 = smov 0  }
   0x3   :  { %s1650_s19 = smov 0   ;;  %s1652_s20 = smov 0  }
   0x4 LB: > { %s1156_s21 = sadd.s32 4294967295, %s1614_s20   ;;  %s1157_s22 = sadd.s32 4294967294, %s1614_s20   ;;  %s1614_s20 = sphi %s1652_s20, %s17_s20   ;;  %s1610_s19 = sphi %s1650_s19, %s2045_s19   ;;  %s1606_s18 = sphi %s1648_s18, %s2044_s18   ;;  %s1602_s17 = sphi %s1646_s17, %s2043_s17   ;;  %s1598_s16 = sphi %s1644_s16, %s2042_s16   ;;  %s1594_s15 = sphi %s1642_s15, %s2041_s15  }
   0x5   : > { %s29_s23 = sadd.s32 1, %s1610_s19  ;;  %s127_s24 = sadd.s32 1, %s1602_s17 }
   0x6   : > { %p31_p0 = scmp.ge.s32.totalorder %s29_s23, 2  ;;  %p137_p1 = scmp.ne.s32.totalorder %s1602_s17, %s1598_s16 }
   0x7   : > { %p138_p2 = scmp.eq.s32.totalorder %s1156_s21, 1  ;;  %p143_p3 = scmp.ne.s32.totalorder %s1598_s16, %s1594_s15 }
   0x8   : > { %s2047_s23 = smov (%p31_p0, %s29_s23), 0  ;;  %p144_p5 = scmp.eq.s32.totalorder %s1157_s22, 1 }
   0x9   : > { %p1682_p4 = por %p138_p2, %p137_p1  ;;  %s122_s26 = ssub.s32 %s1610_s19, %s2047_s23 }
   0xa   : > { %p1160_p6 = scmp.ge.s32.totalorder %s1614_s20, 1  ;;  %p125_p7 = scmp.eq.s32.totalorder %s122_s26, 0 }
   0xb   : > { %p1689_p8 = por %p144_p5, %p143_p3  ;;  %p178_p9 = scmp.lt.s32.totalorder %s1614_s20, 3 }
   0xc   : > { %s1695_s28 = scalar_select %p125_p7, %s1602_s17, %s127_s24  }
   0xd   : > { %p179_p10 = pnand %p1160_p6, %p178_p9 }
   0xe   : > { %p203_p11 = scmp.lt.s32.totalorder (!%p179_p10), %s1606_s18, 1  ;;  %s200_s8 = sand.u32 (!%p179_p10), 1, %s1598_s16  }
   0xf   : > { %182 = sbr.rel (%p179_p10) target bundleno = 886 (0x376), region = 36  ;;  %s1161_s10 = sshll.u32 (!%p179_p10), %s200_s8, 3 }
  0x10   : > { %s1404_s11 = sshll.u32 (!%p179_p10), %s1606_s18, 3  ;;  %s202_s22 = scalar_lea.vmem (!%p179_p10), [#allocation4], %s1161_s10 }
  0x11   : > { %s1081_s13 = scalar_lea.hbm (!%p179_p10), %s2038_s4, %s1404_s11  ;;  %s1083_s24 = sshll.u32 (!%p179_p10), %s202_s22, 4  ;;  %s1084_s24 = int_to_ptr.vmem [resolvable:$true] %s1083_s24 }
  0x12   : > { %s1085_s26 = sshll.u32 (!%p179_p10), %s1081_s13, 4  ;;  %s1556_s7 = scalar_lea.hbm (!%p179_p10), %s2038_s4, 16  ;;  %s1086_s26 = int_to_ptr.hbm [resolvable:$true] %s1085_s26 }
  0x13   : > { %s1550_s29 = sshra.s32 (!%p179_p10), %s1086_s26, 4  ;;  %s1551_s29 = int_to_ptr.hbm [resolvable:$true] %s1550_s29 }
  0x14   : > { %v1213_v0 = vld [vmem:[%s2035_s1 + $0x60] sm:$0xf]  ;;  %v1425_v1 = vld [vmem:[%s2035_s1 + $0x8c] sm:$0xf0]  ;;  %v1419_v2 = vld [vmem:[%s2035_s1 + $0x64] sm:$0xf]  ;;  %p1557_p1 = scmp.lt.s32.totalorder %s1551_s29, %s2038_s4 }
  0x15   : > { %v1214_v3 = vor.u32 %v1425_v1, %v1213_v0  ;;  %v1215_v4 = vld [vmem:[%s2035_s1 + $0x90] sm:$0xf0]  ;;  %v1165_v5 = vld [vmem:[%s2035_s1] sm:$0xf]  ;;  %v1413_v6 = vld [vmem:[%s2035_s1 + $0x2c] sm:$0xf0] }
  0x16   : > { %v1218_v7 = vor.u32 %v1419_v2, %v1215_v4  ;;  %v1407_v8 = vld [vmem:[%s2035_s1 + $0x4] sm:$0xf]  ;;  %v1167_v9 = vld [vmem:[%s2035_s1 + $0x30] sm:$0xf0]  ;;  %v1166_v10 = vor.u32 %v1413_v6, %v1165_v5  ;;  %v1221_v11 = vld [vmem:[%s2035_s1 + $0x68] sm:$0xf] }
  0x17   : > { %367 = vmatpush.bf16.msra.mxu0 %v1214_v3  ;;  %v1426_v12 = vld [vmem:[%s2035_s1 + $0x94] sm:$0xf0]  ;;  %v1173_v13 = vld [vmem:[%s2035_s1 + $0x8] sm:$0xf]  ;;  %v1170_v14 = vor.u32 %v1407_v8, %v1167_v9  ;;  %s204_s9 = scalar_select %p203_p11, %s1606_s18, 1  ;;  %vm357_vm0 = vcmask 261120  }
  0x18   : > { %380 = vmatpush.bf16.msra.mxu3 %v1218_v7  ;;  %v1222_v15 = vor.u32 %v1426_v12, %v1221_v11  ;;  %v1414_v16 = vld [vmem:[%s2035_s1 + $0x34] sm:$0xf0]  ;;  %v1421_v17 = vld [vmem:[%s2035_s1 + $0x74] sm:$0xf]  ;;  %v1231_v18 = vld [vmem:[%s2035_s1 + $0xa0] sm:$0xf0] }
  0x19   : > { %v1420_v19 = vld [vmem:[%s2035_s1 + $0x6c] sm:$0xf]  ;;  %v1223_v20 = vld [vmem:[%s2035_s1 + $0x98] sm:$0xf0]  ;;  %s1162_s30 = sshll.u32 %s204_s9, 2  ;;  %v1174_v21 = vor.u32 %v1414_v16, %v1173_v13  ;;  %v1234_v22 = vor.u32 %v1421_v17, %v1231_v18  ;;  %vm577_vm1 = vcmask 1043456  }
  0x1a   : > { %393 = vmatpush.bf16.msra.mxu2 %v1222_v15  ;;  %v1226_v23 = vor.u32 %v1420_v19, %v1223_v20  ;;  %v1229_v24 = vld [vmem:[%s2035_s1 + $0x70] sm:$0xf]  ;;  %v1427_v25 = vld [vmem:[%s2035_s1 + $0x9c] sm:$0xf0]  ;;  %s206_s12 = scalar_lea.vmem %s2034_s0, %s1162_s30  ;;  %v1409_v27 = vld [vmem:[%s2035_s1 + $0x14] sm:$0xf] }
  0x1b   : > { %368 = vmatpush.bf16.msra.mxu0 %v1166_v10  ;;  %v1230_v26 = vor.u32 %v1427_v25, %v1229_v24  ;;  %v1183_v28 = vld [vmem:[%s2035_s1 + $0x40] sm:$0xf0]  ;;  %v1408_v29 = vld [vmem:[%s2035_s1 + $0xc] sm:$0xf]  ;;  %v1765_v30 = vld [vmem:[%s206_s12] sm:$0xf]  ;;  %432 = vmatpush.bf16.msra.mxu1 %v1234_v22 }
  0x1c   : > { %381 = vmatpush.bf16.msra.mxu3 %v1170_v14  ;;  %v1186_v31 = vor.u32 %v1409_v27, %v1183_v28  ;;  %v1175_v32 = vld [vmem:[%s2035_s1 + $0x38] sm:$0xf0]  ;;  %v1181_v33 = vld [vmem:[%s2035_s1 + $0x10] sm:$0xf]  ;;  %v1415_v35 = vld [vmem:[%s2035_s1 + $0x3c] sm:$0xf0] }
  0x1d   : > { %v1178_v34 = vor.u32 %v1408_v29, %v1175_v32  ;;  %v1237_v36 = vld [vmem:[%s2035_s1 + $0x78] sm:$0xf]  ;;  %v1428_v37 = vld [vmem:[%s2035_s1 + $0xa4] sm:$0xf0]  ;;  %v1182_v38 = vor.u32 %v1415_v35, %v1181_v33  ;;  %v1422_v42 = vld [vmem:[%s2035_s1 + $0x7c] sm:$0xf] }
  0x1e   : > { %1259 = vmatmul.msk.bf16.vlgmr.msra.gmra.mxu0 %vm357_vm0, %v1765_v30  ;;  %394 = vmatpush.bf16.msra.mxu2 %v1174_v21  ;;  %v1238_v39 = vor.u32 %v1428_v37, %v1237_v36  ;;  %v1189_v40 = vld [vmem:[%s2035_s1 + $0x18] sm:$0xf]  ;;  %v1416_v41 = vld [vmem:[%s2035_s1 + $0x44] sm:$0xf0]  ;;  %v1239_v43 = vld [vmem:[%s2035_s1 + $0xa8] sm:$0xf0] }
  0x1f   : > { %419 = vmatpush.bf16.msrb.mxu0 %v1230_v26  ;;  %1260 = vmatmul.msk.bf16.vlgmr.msra.gmra.mxu3 %vm357_vm0, %v1765_v30  ;;  %v1410_v44 = vld [vmem:[%s2035_s1 + $0x1c] sm:$0xf]  ;;  %v1191_v45 = vld [vmem:[%s2035_s1 + $0x48] sm:$0xf0]  ;;  %v1190_v46 = vor.u32 %v1416_v41, %v1189_v40  ;;  %v1242_v47 = vor.u32 %v1422_v42, %v1239_v43  ;;  %v1245_v49 = vld [vmem:[%s2035_s1 + $0x80] sm:$0xf] }
  0x20   : > { %406 = vmatpush.bf16.msrb.mxu3 %v1226_v23  ;;  %433 = vmatpush.bf16.msra.mxu1 %v1186_v31  ;;  %v1194_v48 = vor.u32 %v1410_v44, %v1191_v45  ;;  %v1429_v50 = vld [vmem:[%s2035_s1 + $0xac] sm:$0xf0]  ;;  %v1424_v52 = vld [vmem:[%s2035_s1 + $0x8c] sm:$0xf]  ;;  %v1255_v53 = vld [vmem:[%s2035_s1 + $0xb8] sm:$0xf0] }
  0x21   : > { %1261 = vmatmul.msk.bf16.vlgmr.msra.gmra.mxu2 %vm357_vm0, %v1765_v30  ;;  %v1246_v51 = vor.u32 %v1429_v50, %v1245_v49  ;;  %v1258_v54 = vor.u32 %v1424_v52, %v1255_v53  ;;  %v1197_v55 = vld [vmem:[%s2035_s1 + $0x20] sm:$0xf]  ;;  %v1417_v56 = vld [vmem:[%s2035_s1 + $0x4c] sm:$0xf0]  ;;  %v1412_v58 = vld [vmem:[%s2035_s1 + $0x2c] sm:$0xf]  ;;  %v530_v53 = vlaneseq }
  0x22   : > { %445 = vmatpush.bf16.msrb.mxu2 %v1238_v39  ;;  %v1198_v57 = vor.u32 %v1417_v56, %v1197_v55  ;;  %v1207_v59 = vld [vmem:[%s2035_s1 + $0x58] sm:$0xf0]  ;;  %v1423_v61 = vld [vmem:[%s2035_s1 + $0x84] sm:$0xf]  ;;  %v1247_v62 = vld [vmem:[%s2035_s1 + $0xb0] sm:$0xf0] }
  0x23   : > { %420 = vmatpush.bf16.msrb.mxu0 %v1182_v38  ;;  %1264 = vmatmul.msk.bf16.vlgmr.msra.gmra.mxu1 %vm357_vm0, %v1765_v30  ;;  %v1210_v60 = vor.u32 %v1412_v58, %v1207_v59  ;;  %v1250_v63 = vor.u32 %v1423_v61, %v1247_v62  ;;  %v1253_v0 = vld [vmem:[%s2035_s1 + $0x88] sm:$0xf]  ;;  %v1430_v1 = vld [vmem:[%s2035_s1 + $0xb4] sm:$0xf0]  ;;  %v1411_v3 = vld [vmem:[%s2035_s1 + $0x24] sm:$0xf] }
  0x24   : > { %407 = vmatpush.bf16.msrb.mxu3 %v1178_v34  ;;  %v1254_v2 = vor.u32 %v1430_v1, %v1253_v0  ;;  %v1199_v4 = vld [vmem:[%s2035_s1 + $0x50] sm:$0xf0]  ;;  %v1205_v6 = vld [vmem:[%s2035_s1 + $0x28] sm:$0xf]  ;;  %v1418_v7 = vld [vmem:[%s2035_s1 + $0x54] sm:$0xf0] }
  0x25   : > { %484 = vmatpush.bf16.msrb.mxu1 %v1250_v63  ;;  %v1202_v5 = vor.u32 %v1411_v3, %v1199_v4  ;;  %v1206_v8 = vor.u32 %v1418_v7, %v1205_v6  ;;  %v535_v55 = vand.u32 127, %v530_v53  ;;  %vm561_vm3 = vcmask 64512   ;;  %s1070_s18 = scalar_lea.sflag [#allocation5], %s200_s8  ;;  %s1552_s30 = scalar_lea.hbm %s1551_s29, 8 }
  0x26   : > { %446 = vmatpush.bf16.msrb.mxu2 %v1190_v46  ;;  %p1553_p12 = scmp.ne.s32.totalorder %s1551_s29, %s1552_s30  ;;  %p1558_p2 = scmp.lt.s32.totalorder %s1556_s7, %s1552_s30 }
  0x27   : > { %471 = vmatpush.bf16.msra.mxu0 %v1246_v51 }
  0x28   : > { %458 = vmatpush.bf16.msra.mxu3 %v1242_v47  ;;  %p1554_p13 = pnand %p1553_p12, %p1682_p4  ;;  %p1559_p3 = por %p1558_p2, %p1557_p1 }
  0x29   : > { %485 = vmatpush.bf16.msrb.mxu1 %v1202_v5 }
  0x2a   : > { %497 = vmatpush.bf16.msra.mxu2 %v1254_v2  ;;  %p1555_p0 = pneg %p1554_p13 }
  0x2b   : > { %472 = vmatpush.bf16.msra.mxu0 %v1198_v57 }
  0x2c   : > { %459 = vmatpush.bf16.msra.mxu3 %v1194_v48  ;;  %p1560_p5 = pnand %p1559_p3, %p1555_p0 }
  0x2e   : > { %1263 = vmatmul.msk.bf16.vlgmr.msrb.gmra.mxu0 %vm357_vm0, %v1765_v30  ;;  %498 = vmatpush.bf16.msra.mxu2 %v1206_v8 }
  0x2f   : > { %1262 = vmatmul.msk.bf16.vlgmr.msrb.gmra.mxu3 %vm357_vm0, %v1765_v30 }
  0x30   : > { %510 = vmatpush.bf16.msrb.mxu3 %v1258_v54  ;;  %v531_v54 = vshrl.u32 %v530_v53, 7 }
  0x31   : > { %1265 = vmatmul.msk.bf16.vlgmr.msrb.gmra.mxu2 %vm357_vm0, %v1765_v30 }
  0x32   : > { %vm536_vm2 = vcmp.le.s32.totalorder %v535_v55, %v531_v54  ;;  %v1432_v54 = vld [vmem:[%s2036_s2 + $0x8] sm:$0xff]  ;;  %v1431_v55 = vld [vmem:[%s2036_s2] sm:$0xff] }
  0x33   : > { %1268 = vmatmul.msk.bf16.vlgmr.msrb.gmra.mxu1 %vm357_vm0, %v1765_v30 }
  0x34   : > { %511 = vmatpush.bf16.msrb.mxu3 %v1210_v60 }
  0x3e   : > { %1267 = vmatmul.msk.bf16.vlgmr.msra.gmra.mxu0 %vm357_vm0, %v1765_v30 }
  0x3f   : > { %1266 = vmatmul.msk.bf16.vlgmr.msra.gmra.mxu3 %vm357_vm0, %v1765_v30 }
  0x41   : > { %1269 = vmatmul.msk.bf16.vlgmr.msra.gmra.mxu2 %vm357_vm0, %v1765_v30 }
  0x4f   : > { %1270 = vmatmul.msk.bf16.vlgmr.msrb.gmra.mxu3 %vm357_vm0, %v1765_v30 }
  0x9b   : > { %v370_v9 = vpop.f32.mrf.mxu0 }
  0xa0   : > { %v435_v10 = vpop.f32.mrf.mxu1 }
  0xa2   : > { %v383_v11 = vpop.f32.mrf.mxu3 }
  0xa3   : > { %v517_v12 = vpack.c.bf16 %v383_v11, %v370_v9  ;;  %v372_v13 = vpop.f32.mrf.mxu0 }
  0xa4   : > { %v396_v14 = vpop.f32.mrf.mxu2 }
  0xa5   : > { %523 = vst [vmem:[#allocation2] sm:$0xff] %v517_v12 }
  0xa8   : > { %v437_v15 = vpop.f32.mrf.mxu1 }
  0xaa   : > { %v385_v16 = vpop.f32.mrf.mxu3 }
  0xab   : > { %v422_v17 = vpop.f32.mrf.mxu0 }
  0xac   : > { %v519_v18 = vpack.c.bf16 %v435_v10, %v422_v17  ;;  %v398_v19 = vpop.f32.mrf.mxu2  ;;  %v544_v27 = vld [vmem:[#allocation2] sm:$0xf]  ;;  %v675_v28 = vld [vmem:[#allocation2 + $0x4] sm:$0xf] }
  0xae   : > { %525 = vst [vmem:[#allocation2 + $0x10] sm:$0xff] %v519_v18 }
  0xb0   : > { %v487_v40 = vpop.f32.mrf.mxu1 }
  0xb2   : > { %v409_v20 = vpop.f32.mrf.mxu3 }
  0xb3   : > { %v518_v21 = vpack.c.bf16 %v409_v20, %v396_v14  ;;  %v424_v22 = vpop.f32.mrf.mxu0 }
  0xb4   : > { %v448_v23 = vpop.f32.mrf.mxu2 }
  0xb5   : > { %524 = vst [vmem:[#allocation2 + $0x8] sm:$0xff] %v518_v21  ;;  %v545_v24 = vld [vmem:[#allocation2 + $0x10] sm:$0xf]  ;;  %v676_v25 = vld [vmem:[#allocation2 + $0x14] sm:$0xf] }
  0xb6   : > { %554 = vmatpush.bf16.xpose.msrb.mxu0 %v545_v24  ;;  %685 = vmatpush.bf16.xpose.msra.mxu3 %v676_v25 }
  0xb8   : > { %v489_v45 = vpop.f32.mrf.mxu1 }
  0xb9   : > { %v1435_v45 = vld [vmem:[%s2036_s2 + $0x20] sm:$0xff] }
  0xba   : > { %v411_v26 = vpop.f32.mrf.mxu3 }
  0xbb   : > { %v474_v37 = vpop.f32.mrf.mxu0 }
  0xbc   : > { %v450_v29 = vpop.f32.mrf.mxu2  ;;  %v804_v35 = vld [vmem:[#allocation2 + $0x8] sm:$0xf]  ;;  %v933_v36 = vld [vmem:[#allocation2 + $0xc] sm:$0xf]  ;;  %v521_v41 = vpack.c.bf16 %v487_v40, %v474_v37  ;;  %v1437_v40 = vld [vmem:[%s2036_s2 + $0x30] sm:$0xff] }
  0xbd   : > { %555 = vmatmul.bf16.vlgmr.msrb.gmra.mxu0 %v544_v27  ;;  %686 = vmatmul.bf16.vlgmr.msra.gmra.mxu3 %v675_v28 }
  0xbe   : > { %527 = vst [vmem:[#allocation2 + $0x20] sm:$0xff] %v521_v41  ;;  %v1445_v41 = vld [vmem:[%s2036_s2 + $0x70] sm:$0xff] }
  0xc2   : > { %v461_v30 = vpop.f32.mrf.mxu3 }
  0xc3   : > { %v520_v31 = vpack.c.bf16 %v461_v30, %v448_v23  ;;  %v476_v39 = vpop.f32.mrf.mxu0 }
  0xc4   : > { %v500_v43 = vpop.f32.mrf.mxu2  ;;  %v1446_v39 = vld [vmem:[%s2036_s2 + $0x78] sm:$0xff] }
  0xc5   : > { %526 = vst [vmem:[#allocation2 + $0x18] sm:$0xff] %v520_v31  ;;  %v546_v46 = vld [vmem:[#allocation2 + $0x20] sm:$0xf]  ;;  %v677_v47 = vld [vmem:[#allocation2 + $0x24] sm:$0xf] }
  0xc6   : > { %v579_v48 = vsel %vm577_vm1, %v546_v46, 0  ;;  %v708_v49 = vsel %vm577_vm1, %v677_v47, 0  ;;  %v1443_v47 = vld [vmem:[%s2036_s2 + $0x60] sm:$0xff] }
  0xc7   : > { %588 = vmatpush.bf16.msra.mxu1 %v579_v48  ;;  %717 = vmatpush.bf16.msra.mxu0 %v708_v49 }
  0xca   : > { %v463_v32 = vpop.f32.mrf.mxu3 }
  0xcb   : > { %789 = vmatpush.bf16.msrb.mxu1 %v1446_v39 }
  0xcc   : > { %v805_v33 = vld [vmem:[#allocation2 + $0x18] sm:$0xf]  ;;  %v934_v34 = vld [vmem:[#allocation2 + $0x1c] sm:$0xf]  ;;  %v502_v50 = vpop.f32.mrf.mxu2 }
  0xcd   : > { %814 = vmatpush.bf16.xpose.msrb.mxu3 %v805_v33  ;;  %v1434_v50 = vld [vmem:[%s2036_s2 + $0x18] sm:$0xff] }
  0xcf   : > { %790 = vmatpush.bf16.msrb.mxu1 %v1445_v41 }
  0xd2   : > { %v513_v38 = vpop.f32.mrf.mxu3 }
  0xd3   : > { %v522_v44 = vpack.c.bf16 %v513_v38, %v500_v43  ;;  %v1438_v38 = vld [vmem:[%s2036_s2 + $0x38] sm:$0xff]  ;;  %v1436_v43 = vld [vmem:[%s2036_s2 + $0x28] sm:$0xff] }
  0xd4   : > { %815 = vmatmul.bf16.vlgmr.msrb.gmra.mxu3 %v804_v35  ;;  %660 = vmatpush.bf16.msrb.mxu2 %v1438_v38 }
  0xd5   : > { %943 = vmatpush.bf16.xpose.msra.mxu3 %v934_v34  ;;  %528 = vst [vmem:[#allocation2 + $0x28] sm:$0xff] %v522_v44  ;;  %v1444_v44 = vld [vmem:[%s2036_s2 + $0x68] sm:$0xff] }
  0xd6   : > { %791 = vmatpush.bf16.msrb.mxu1 %v1444_v44 }
  0xd8   : > { %661 = vmatpush.bf16.msrb.mxu2 %v1437_v40 }
  0xda   : > { %v515_v42 = vpop.f32.mrf.mxu3  ;;  %792 = vmatpush.bf16.msrb.mxu1 %v1443_v47 }
  0xdc   : > { %v806_v51 = vld [vmem:[#allocation2 + $0x28] sm:$0xf]  ;;  %v935_v35 = vld [vmem:[#allocation2 + $0x2c] sm:$0xf]  ;;  %662 = vmatpush.bf16.msrb.mxu2 %v1436_v43 }
  0xdd   : > { %v837_v52 = vsel %vm577_vm1, %v806_v51, 0  ;;  %v966_v37 = vsel %vm577_vm1, %v935_v35, 0  ;;  %v1442_v51 = vld [vmem:[%s2036_s2 + $0x58] sm:$0xff] }
  0xde   : > { %846 = vmatpush.bf16.msrb.mxu0 %v837_v52  ;;  %v1433_v52 = vld [vmem:[%s2036_s2 + $0x10] sm:$0xff]  ;;  %793 = vmatpush.bf16.msrb.mxu1 %v1442_v51 }
  0xe0   : > { %663 = vmatpush.bf16.msrb.mxu2 %v1435_v45 }
  0xe4   : > { %944 = vmatmul.bf16.vlgmr.msra.gmra.mxu3 %v933_v36  ;;  %664 = vmatpush.bf16.msrb.mxu2 %v1434_v50 }
  0xe8   : > { %665 = vmatpush.bf16.msrb.mxu2 %v1433_v52 }
  0xec   : > { %666 = vmatpush.bf16.msrb.mxu2 %v1432_v54 }
  0xf0   : > { %667 = vmatpush.bf16.msrb.mxu2 %v1431_v55 }
 0x13a   : > { %v556_v56 = vpop.f32.mrf.mxu0 }
 0x13b   : > { %v560_v57 = vsel %vm536_vm2, %v556_v56, -1e+30 }
 0x13c   : > { %v562_v58 = vsel %vm561_vm3, %v560_v57, -inf }
 0x13d   : > { %563 = vmax.xlane.f32.xlu0 %v562_v58 }
 0x140   : > { %v687_v59 = vpop.f32.mrf.mxu3 }
 0x141   : > { %v691_v60 = vsel %vm536_vm2, %v687_v59, -1e+30  ;;  %v1441_v59 = vld [vmem:[%s2036_s2 + $0x50] sm:$0xff] }
 0x142   : > { %v558_v61 = vpop.f32.mrf.mxu0  ;;  %v692_v62 = vsel %vm561_vm3, %v691_v60, -inf  ;;  %794 = vmatpush.bf16.msrb.mxu1 %v1441_v59 }
 0x143   : > { %v1440_v61 = vld [vmem:[%s2036_s2 + $0x48] sm:$0xff] }
 0x145   : > { %693 = vmax.xlane.f32.xlu0 %v692_v62  ;;  %v1453_v62 = vld [vmem:[%s2036_s2 + $0xb0] sm:$0xff] }
 0x146   : > { %795 = vmatpush.bf16.msrb.mxu1 %v1440_v61 }
 0x148   : > { %v689_v63 = vpop.f32.mrf.mxu3 }
 0x149   : > { %v1439_v63 = vld [vmem:[%s2036_s2 + $0x40] sm:$0xff] }
 0x14a   : > { %796 = vmatpush.bf16.msrb.mxu1 %v1439_v63 }
 0x157   : > { %v816_v0 = vpop.f32.mrf.mxu3 }
 0x158   : > { %v820_v1 = vsel %vm536_vm2, %v816_v0, -1e+30  ;;  %v1452_v0 = vld [vmem:[%s2036_s2 + $0xa8] sm:$0xff] }
 0x159   : > { %v821_v2 = vsel %vm561_vm3, %v820_v1, -inf }
 0x15a   : > { %822 = vmax.xlane.f32.xlu1 %v821_v2  ;;  %v1450_v2 = vld [vmem:[%s2036_s2 + $0x98] sm:$0xff] }
 0x15f   : > { %v818_v3 = vpop.f32.mrf.mxu3 }
 0x160   : > { %v1462_v3 = vld [vmem:[%s2036_s2 + $0xf8] sm:$0xff] }
 0x167   : > { %v945_v4 = vpop.f32.mrf.mxu3 }
 0x168   : > { %v949_v5 = vsel %vm536_vm2, %v945_v4, -1e+30  ;;  %v1449_v4 = vld [vmem:[%s2036_s2 + $0x90] sm:$0xff] }
 0x169   : > { %v950_v6 = vsel %vm561_vm3, %v949_v5, -inf }
 0x16a   : > { %951 = vmax.xlane.f32.xlu1 %v950_v6  ;;  %v1448_v6 = vld [vmem:[%s2036_s2 + $0x88] sm:$0xff] }
 0x16f   : > { %v947_v7 = vpop.f32.mrf.mxu3 }
 0x170   : > { %v1460_v7 = vld [vmem:[%s2036_s2 + $0xe8] sm:$0xff] }
 0x1b0   : > { %v564_v8 = vpop.xlane.xlu0 %563 }
 0x1b1   : > { %v565_v9 = vsub.f32 %v560_v57, %v564_v8  ;;  %v1447_v8 = vld [vmem:[%s2036_s2 + $0x80] sm:$0xff] }
 0x1b3   : > { %v566_v10 = vmul.f32 1.442695, %v565_v9  ;;  %v1459_v9 = vld [vmem:[%s2036_s2 + $0xe0] sm:$0xff] }
 0x1b5   : > { %1520 = vpow2.f32 %v566_v10  ;;  %v1458_v10 = vld [vmem:[%s2036_s2 + $0xd8] sm:$0xff] }
 0x1b8   : > { %v694_v11 = vpop.xlane.xlu0 %693 }
 0x1b9   : > { %v695_v12 = vsub.f32 %v691_v60, %v694_v11  ;;  %v1454_v60 = vld [vmem:[%s2036_s2 + $0xb8] sm:$0xff] }
 0x1ba   : > { %918 = vmatpush.bf16.msra.mxu2 %v1454_v60 }
 0x1bb   : > { %v1521_v13 = vpop.eup %1520  ;;  %v696_v14 = vmul.f32 1.442695, %v695_v12 }
 0x1bc   : > { %v568_v15 = vsel %vm561_vm3, %v1521_v13, 0.0 }
 0x1bd   : > { %1522 = vpow2.f32 %v696_v14  ;;  %569 = vadd.xlane.f32.xlu2 %v568_v15  ;;  %v1456_v14 = vld [vmem:[%s2036_s2 + $0xc8] sm:$0xff] }
 0x1be   : > { %919 = vmatpush.bf16.msra.mxu2 %v1453_v62 }
 0x1c2   : > { %920 = vmatpush.bf16.msra.mxu2 %v1452_v0 }
 0x1c3   : > { %v1523_v16 = vpop.eup %1522 }
 0x1c4   : > { %v698_v17 = vsel %vm561_vm3, %v1523_v16, 0.0 }
 0x1c5   : > { %699 = vadd.xlane.f32.xlu2 %v698_v17 }
 0x1cd   : > { %v823_v18 = vpop.xlane.xlu1 %822 }
 0x1ce   : > { %v824_v19 = vsub.f32 %v820_v1, %v823_v18  ;;  %v1451_v1 = vld [vmem:[%s2036_s2 + $0xa0] sm:$0xff] }
 0x1cf   : > { %921 = vmatpush.bf16.msra.mxu2 %v1451_v1  ;;  %v1455_v18 = vld [vmem:[%s2036_s2 + $0xc0] sm:$0xff] }
 0x1d0   : > { %v825_v20 = vmul.f32 1.442695, %v824_v19 }
 0x1d2   : > { %1524 = vpow2.f32 %v825_v20  ;;  %v1616_v20 = vmov 0.0  }
 0x1d3   : > { %922 = vmatpush.bf16.msra.mxu2 %v1450_v2  ;;  %538 = vst.msk [vmem:[#allocation3] sm:$0xff] %vm357_vm0, %v1616_v20 }
 0x1d7   : > { %923 = vmatpush.bf16.msra.mxu2 %v1449_v4 }
 0x1d8   : > { %v1525_v21 = vpop.eup %1524 }
 0x1d9   : > { %v827_v22 = vsel %vm561_vm3, %v1525_v21, 0.0 }
 0x1da   : > { %828 = vadd.xlane.f32.xlu0 %v827_v22 }
 0x1db   : > { %924 = vmatpush.bf16.msra.mxu2 %v1448_v6 }
 0x1dd   : > { %v952_v23 = vpop.xlane.xlu1 %951 }
 0x1de   : > { %v953_v24 = vsub.f32 %v949_v5, %v952_v23  ;;  %v1461_v5 = vld [vmem:[%s2036_s2 + $0xf0] sm:$0xff] }
 0x1df   : > { %925 = vmatpush.bf16.msra.mxu2 %v1447_v8 }
 0x1e0   : > { %v954_v25 = vmul.f32 1.442695, %v953_v24 }
 0x1e2   : > { %1526 = vpow2.f32 %v954_v25 }
 0x1e8   : > { %v1527_v26 = vpop.eup %1526 }
 0x1e9   : > { %v956_v27 = vsel %vm561_vm3, %v1527_v26, 0.0 }
 0x1ea   : > { %957 = vadd.xlane.f32.xlu1 %v956_v27  ;;  %v595_v27 = vld [vmem:[#allocation3] sm:$0xff] }
 0x230   : > { %v570_v28 = vpop.xlane.xlu2 %569 }
 0x231   : > { %1528 = vrcp.f32 %v570_v28 }
 0x237   : > { %v1529_v29 = vpop.eup %1528 }
 0x238   : > { %v572_v30 = vmul.f32 %v1529_v29, %v1521_v13  ;;  %v700_v31 = vpop.xlane.xlu2 %699  ;;  %v1457_v13 = vld [vmem:[%s2036_s2 + $0xd0] sm:$0xff] }
 0x239   : > { %1530 = vrcp.f32 %v700_v31 }
 0x23a   : > { %v573_v32 = vpack.c.bf16 %v572_v30, %v572_v30 }
 0x23c   : > { %1271 = vmatmul.msk.bf16.vlgmr.msra.gmra.mxu1 %vm561_vm3, %v573_v32 }
 0x23d   : > { %1047 = vmatpush.bf16.msra.mxu1 %v1462_v3 }
 0x23f   : > { %v1531_v33 = vpop.eup %1530 }
 0x240   : > { %v702_v34 = vmul.f32 %v1531_v33, %v1523_v16 }
 0x241   : > { %1048 = vmatpush.bf16.msra.mxu1 %v1461_v5 }
 0x242   : > { %v703_v36 = vpack.c.bf16 %v702_v34, %v702_v34 }
 0x244   : > { %1304 = vmatmul.msk.bf16.vlgmr.msra.gmra.mxu0 %vm561_vm3, %v703_v36 }
 0x245   : > { %975 = vmatpush.bf16.msra.mxu0 %v966_v37  ;;  %1049 = vmatpush.bf16.msra.mxu1 %v1460_v7 }
 0x249   : > { %1050 = vmatpush.bf16.msra.mxu1 %v1459_v9 }
 0x24d   : > { %v829_v42 = vpop.xlane.xlu0 %828  ;;  %1051 = vmatpush.bf16.msra.mxu1 %v1458_v10 }
 0x24e   : > { %1532 = vrcp.f32 %v829_v42  ;;  %v1519_v42 = vld [vmem:[%s2037_s3] ss:$0 sm:$0xff] }
 0x251   : > { %1052 = vmatpush.bf16.msra.mxu1 %v1457_v13 }
 0x254   : > { %v1533_v46 = vpop.eup %1532 }
 0x255   : > { %v831_v48 = vmul.f32 %v1533_v46, %v1525_v21  ;;  %1053 = vmatpush.bf16.msra.mxu1 %v1456_v14 }
 0x257   : > { %v832_v49 = vpack.c.bf16 %v831_v48, %v831_v48 }
 0x259   : > { %1337 = vmatmul.msk.bf16.vlgmr.msrb.gmra.mxu0 %vm561_vm3, %v832_v49  ;;  %1054 = vmatpush.bf16.msra.mxu1 %v1455_v18 }
 0x25d   : > { %v958_v53 = vpop.xlane.xlu1 %957 }
 0x25e   : > { %1534 = vrcp.f32 %v958_v53 }
 0x264   : > { %v1535_v56 = vpop.eup %1534 }
 0x265   : > { %v960_v57 = vmul.f32 %v1535_v56, %v1527_v26 }
 0x267   : > { %v961_v58 = vpack.c.bf16 %v960_v57, %v960_v57 }
 0x269   : > { %1370 = vmatmul.msk.bf16.vlgmr.msra.gmra.mxu0 %vm561_vm3, %v961_v58 }
 0x2b9   : > { %v590_v11 = vpop.f32.mrf.mxu1 }
 0x2ba   : > { %v594_v12 = vpack.c.bf16 %v590_v11, %v590_v11 }
 0x2bc   : > { %668 = vmatmul.bf16.vlgmr.msrb.gmra.mxu2 %v594_v12 }
 0x2c1   : > { %v592_v15 = vpop.f32.mrf.mxu1  ;;  %v719_v16 = vpop.f32.mrf.mxu0 }
 0x2c2   : > { %v723_v17 = vpack.c.bf16 %v719_v16, %v719_v16 }
 0x2c4   : > { %797 = vmatmul.bf16.vlgmr.msrb.gmra.mxu1 %v723_v17 }
 0x2c9   : > { %v721_v19 = vpop.f32.mrf.mxu0 }
 0x2d6   : > { %v848_v21 = vpop.f32.mrf.mxu0 }
 0x2d7   : > { %v852_v22 = vpack.c.bf16 %v848_v21, %v848_v21 }
 0x2d9   : > { %926 = vmatmul.bf16.vlgmr.msra.gmra.mxu2 %v852_v22 }
 0x2de   : > { %v850_v23 = vpop.f32.mrf.mxu0 }
 0x2e6   : > { %v977_v24 = vpop.f32.mrf.mxu0 }
 0x2e7   : > { %v981_v25 = vpack.c.bf16 %v977_v24, %v977_v24 }
 0x2e9   : > { %1055 = vmatmul.bf16.vlgmr.msra.gmra.mxu1 %v981_v25 }
 0x2ee   : > { %v979_v26 = vpop.f32.mrf.mxu0 }
 0x33f   : > { %v669_v28 = vpop.f32.mrf.mxu2 }
 0x340   : > { %v673_v29 = vadd.f32 %v669_v28, %v595_v27 }
 0x341   : > { %v798_v30 = vpop.f32.mrf.mxu1 }
 0x342   : > { %674 = vst.msk [vmem:[#allocation3] sm:$0xff] %vm357_vm0, %v673_v29 }
 0x347   : > { %v671_v31 = vpop.f32.mrf.mxu2 }
 0x349   : > { %v724_v32 = vld [vmem:[#allocation3] sm:$0xff]  ;;  %v800_v33 = vpop.f32.mrf.mxu1 }
 0x34a   : > { %v802_v34 = vadd.f32 %v798_v30, %v724_v32 }
 0x34c   : > { %803 = vst.msk [vmem:[#allocation3] sm:$0xff] %vm357_vm0, %v802_v34 }
 0x353   : > { %v853_v35 = vld [vmem:[#allocation3] sm:$0xff] }
 0x35c   : > { %v927_v36 = vpop.f32.mrf.mxu2 }
 0x35d   : > { %v931_v37 = vadd.f32 %v927_v36, %v853_v35 }
 0x35f   : > { %932 = vst.msk [vmem:[#allocation3] sm:$0xff] %vm357_vm0, %v931_v37 }
 0x364   : > { %v929_v38 = vpop.f32.mrf.mxu2 }
 0x366   : > { %v982_v39 = vld [vmem:[#allocation3] sm:$0xff]  ;;  %v1056_v40 = vpop.f32.mrf.mxu1 }
 0x367   : > { %v1060_v41 = vadd.f32 %v1056_v40, %v982_v39 }
 0x369   : > { %1061 = vst.msk [vmem:[#allocation3] sm:$0xff] %vm357_vm0, %v1060_v41 }
 0x36e   : > { %v1058_v43 = vpop.f32.mrf.mxu1 }
 0x370   : > { %v1062_v44 = vld [vmem:[#allocation3] sm:$0xff] }
 0x371   : > { %v1067_v45 = vadd.f32 %v1519_v42, %v1062_v44 }
 0x373   : > { %1068 = vst.msk [vmem:[%s202_s22] sm:$0xff] %vm357_vm0, %v1067_v45 }
 0x374   : > { %1563 = shalt.err (!%p1560_p5)
}
 0x375   : > { %1463 = dma.vmem_to_hbm [thread:$0]  (%p1682_p4), %s1084_s24, 128, %s1086_s26, %s1070_s18  }
 0x376 PF: > { %p1469_p6 = scmp.ge.s32.totalorder %s1614_s20, 2  ;;  %s1097_s8 = sand.u32 1, %s1594_s15  }
 0x377   : > { %s1098_s12 = scalar_lea.sflag [#allocation5], %s1097_s8 }
 0x378   : > { %p1466_p7 = pnand %p1469_p6, %p1689_p8 }
 0x37a   : > { %p1467_p9 = pneg %p1466_p7 }
 0x37c   : > { %1589 = dma.done.wait (%p1467_p9), %s1098_s12, 128  }
 0x37d   : > { %1591 = vsyncadd (%p1467_p9), %s1098_s12, 4294967168  ;;  %s17_s20 = sadd.s32 1, %s1614_s20   ;;  %s2041_s15 = smov %s1598_s16 }
 0x37e   : > { %p14_p10 = scmp.ge.s32.totalorder %s17_s20, 4   ;;  %s2042_s16 = smov %s1602_s17 }
 0x37f   : > { %s2043_s17 = smov %s1695_s28  ;;  %s2044_s18 = smov %s1610_s19 }
 0x380   : > { %s2045_s19 = smov %s2047_s23  ;;  %16 = sbr.rel (!%p14_p10) target bundleno = 4 (0x4), region = 76 }
 0x385   :  { %1104 = vsyncpa [#allocation5], 1 }
 0x386   :  { %1106 = vsyncpa [#allocation5 + $0x1], 1 }

</bundles_post_ra>
